<compile_context>
chip_gen: v7x
topology: tpu7x:2x2x1
jax: 0.10.0
libtpu: 0.0.40
codegen_flags: <defaults>
</compile_context>

<pallas_src>
import functools

import jax
import jax.numpy as jnp
from jax.experimental import pallas as pl
from jax.experimental.pallas import tpu as pltpu

# ---------------- scaled-down, deterministic config ----------------
BATCH = 2
NUM_JOINTS = 16
VOLUME_SIZE = 8
CUBOID_SIDE = 2.0
VOLUME_MULTIPLIER = 1.0
VOLUME_SOFTMAX = True
IMG_H = IMG_W = 32            # input images (scaled down from 1024x1280)
FEAT_H = FEAT_W = 8           # backbone feature spatial size (stride 4)
UP_H = UP_W = 16              # nn.Upsample target   (scaled from 1024x1024)
PAD_W = 2                     # ConstantPad2d width  (scaled from 128)
PF_IN, PF_OUT = 256, 32       # process_features Conv2d(256, 32, 1)
V2V_IN = PF_OUT + 1           # with_scene=True, with_intersection=False -> 33


# =====================  Pallas kernels  =====================

def _matmul_bias_kernel(w_ref, x_ref, b_ref, o_ref):
    # (Cout, Cin) @ (Cin, tn) + (Cout, 1)  -> lane-dense (Cout, tn) output
    o_ref[...] = (
        jnp.dot(w_ref[...], x_ref[...], preferred_element_type=jnp.float32)
        + b_ref[...]
    )


def fused_conv1x1_lane_dense(x_km, w_nk, b_n, tn=512):
    """Lane-dense 1x1 conv:  x (K, M), w (N, K), b (N,)  ->  (N, M).

    Output last dim is the spatial dim (multiple of 128) so stores are
    unmasked vst.  Inputs are cast to bf16 (f32 accumulation on the MXU).
    """
    K, M = x_km.shape
    N = w_nk.shape[0]
    tn = min(tn, M)
    assert M % tn == 0
    return pl.pallas_call(
        _matmul_bias_kernel,
        out_shape=jax.ShapeDtypeStruct((N, M), jnp.float32),
        grid=(M // tn,),
        in_specs=[
            pl.BlockSpec((N, K), lambda i: (0, 0)),
            pl.BlockSpec((K, tn), lambda i: (0, i)),
            pl.BlockSpec((N, 1), lambda i: (0, 0)),
        ],
        out_specs=pl.BlockSpec((N, tn), lambda i: (0, i)),
        compiler_params=pltpu.CompilerParams(dimension_semantics=("parallel",)),
    )(w_nk.astype(jnp.bfloat16), x_km.astype(jnp.bfloat16),
      b_n.reshape(N, 1).astype(jnp.float32))


def _unproj_v2v_integrate_kernel(
        f00, f01, f10, f11, w00, w01, w10, w11, scene,
        wv_main, wv_scene, bv, coord,
        kp_ref, prob_ref, *, multiplier, softmax):
    # ---- bilinear combine; weights are (1, N) and broadcast over C on-chip ----
    vol = (f00[0] * w00[0] + f01[0] * w01[0]
           + f10[0] * w10[0] + f11[0] * w11[0])                   # (C, N)

    # ---- fused V2V 1x1x1 conv (33 -> J); scene channel handled by broadcast ----
    logits = (jnp.dot(wv_main[...], vol, preferred_element_type=jnp.float32)
              + wv_scene[...] * scene[0]                          # (J,1)*(1,N)
              + bv[...])                                          # (J, N)

    x = logits * multiplier
    if softmax:
        m = jnp.max(x, axis=-1, keepdims=True)
        e = jnp.exp(x - m)
        s = jnp.sum(e, axis=-1, keepdims=True)
        p = e * pl.reciprocal(s, approx=True)                     # EUP, ~free
    else:
        p = jnp.maximum(x, 0.0)

    prob_ref[0] = p                                               # (J, N) lane-dense
    kp_ref[0] = jnp.dot(p, coord[0], preferred_element_type=jnp.float32)


def unproj_v2v_integrate_pallas(f00, f01, f10, f11, w00, w01, w10, w11, scene,
                                wv_main, wv_scene, bv, coord_flat,
                                multiplier, softmax):
    """Per-batch fusion of bilerp + scene-concat + 1x1x1 conv + softmax-integrate.

    grid=(B,) marked parallel so v7x can shard batches across its 2 TensorCores.
    # TODO(synk): at production scale (VOLUME_SIZE=64 -> N=262144) this kernel
    # must additionally tile over N with an online (m, l, acc) softmax to fit
    # v7x's 64 MiB VMEM; N=512 here fits a single block per batch.
    """
    B, C, N = f00.shape
    J = wv_main.shape[0]
    kernel = functools.partial(_unproj_v2v_integrate_kernel,
                               multiplier=multiplier, softmax=softmax)
    feat_spec = pl.BlockSpec((1, C, N), lambda b: (b, 0, 0))
    wt_spec = pl.BlockSpec((1, 1, N), lambda b: (b, 0, 0))
    kp, probs = pl.pallas_call(
        kernel,
        out_shape=(jax.ShapeDtypeStruct((B, J, 3), jnp.float32),
                   jax.ShapeDtypeStruct((B, J, N), jnp.float32)),
        grid=(B,),
        in_specs=[feat_spec] * 4 + [wt_spec] * 4 + [wt_spec] + [
            pl.BlockSpec((J, C), lambda b: (0, 0)),
            pl.BlockSpec((J, 1), lambda b: (0, 0)),
            pl.BlockSpec((J, 1), lambda b: (0, 0)),
            pl.BlockSpec((1, N, 3), lambda b: (b, 0, 0)),
        ],
        out_specs=(pl.BlockSpec((1, J, 3), lambda b: (b, 0, 0)),
                   pl.BlockSpec((1, J, N), lambda b: (b, 0, 0))),
        compiler_params=pltpu.CompilerParams(dimension_semantics=("parallel",)),
    )(f00, f01, f10, f11, w00, w01, w10, w11, scene,
      wv_main, wv_scene, bv, coord_flat)
    return kp, probs


# =====================  JAX glue ops  =====================

def gather_bilinear_taps(f, grid_coord_proj_batch):
    """op.unproject_heatmaps_one_view_batch tap gathering.

    Projected coords live in the (Upsample + ConstantPad2d) map frame, but the
    nearest-upsample + zero-pad are pure index arithmetic, so we gather directly
    from the small pre-upsample (FEAT_H, FEAT_W) map: identical values, ~5x
    smaller working set, no materialized upsample on the sampling path.
    """
    B, C, Hs, Ws = f.shape
    N = grid_coord_proj_batch.shape[1]
    sH = UP_H // FEAT_H
    sW = UP_W // FEAT_W
    u = grid_coord_proj_batch[..., 0]
    v = grid_coord_proj_batch[..., 1]
    u0 = jnp.floor(u)
    v0 = jnp.floor(v)
    u1 = u0 + 1.0
    v1 = v0 + 1.0
    wu1 = u - u0
    wu0 = 1.0 - wu1
    wv1 = v - v0
    wv0 = 1.0 - wv1
    flat = f.reshape(B, C, Hs * Ws)

    def gather(ui, vi):
        # taps in the zero-pad region (or fully out of bounds) contribute 0
        valid = ((ui >= PAD_W) & (ui <= PAD_W + UP_W - 1)
                 & (vi >= 0) & (vi <= UP_H - 1))
        uo = jnp.clip(ui - PAD_W, 0, UP_W - 1).astype(jnp.int32) // sW
        vo = jnp.clip(vi, 0, UP_H - 1).astype(jnp.int32) // sH
        idx = vo * Ws + uo                                        # (B, N)
        g = jnp.take_along_axis(
            flat, jnp.broadcast_to(idx[:, None, :], (B, C, N)), axis=2)
        return g, valid.astype(jnp.float32)

    f00, m00 = gather(u0, v0)
    f01, m01 = gather(u1, v0)
    f10, m10 = gather(u0, v1)
    f11, m11 = gather(u1, v1)
    # weights stay (B, 1, N): broadcast over C happens inside the Pallas kernel
    w00 = (wu0 * wv0 * m00)[:, None, :]
    w01 = (wu1 * wv0 * m01)[:, None, :]
    w10 = (wu0 * wv1 * m10)[:, None, :]
    w11 = (wu1 * wv1 * m11)[:, None, :]
    return f00, f01, f10, f11, w00, w01, w10, w11


def build_coord_volume(volume_size, cuboid_side):
    sides = jnp.array([cuboid_side, cuboid_side, cuboid_side], jnp.float32)
    position = jnp.array([-cuboid_side / 2, -cuboid_side / 2, 0.0], jnp.float32)
    xxx, yyy, zzz = jnp.meshgrid(jnp.arange(volume_size), jnp.arange(volume_size),
                                 jnp.arange(volume_size), indexing="ij")
    grid = jnp.stack([xxx, yyy, zzz], axis=-1).astype(jnp.float32).reshape(-1, 3)
    grid_coord = position[None, :] + sides[None, :] / (volume_size - 1) * grid
    return grid_coord.reshape(volume_size, volume_size, volume_size, 3)


def synthetic_grid_coord_proj(coord_volume, batch_size, feat_h, feat_w):
    # TODO(synk): the real FishEyeCameraCalibrated projection is external data;
    # use a deterministic pinhole-like projection onto the padded feature map.
    pts = coord_volume.reshape(-1, 3)
    denom = pts[:, 2] + 2.0
    u = (pts[:, 0] / denom + 0.5) * (feat_w - 1)
    v = (pts[:, 1] / denom + 0.5) * (feat_h - 1)
    proj = jnp.stack([u, v], axis=-1)
    return jnp.broadcast_to(proj[None], (batch_size,) + proj.shape)


# =====================  forward pass  =====================

def forward(params, images, grid_coord_proj_batch, coord_volumes, scene_volumes):
    B = images.shape[0]
    N = VOLUME_SIZE ** 3

    # ---- backbone (stand-in) ----
    # TODO(synk): full pose_resnet backbone is not reproducible here; stand-in =
    # stride-4 average pool + 1x1 conv to 256 channels.
    x = images.reshape(B, 3, FEAT_H, IMG_H // FEAT_H, FEAT_W, IMG_W // FEAT_W)
    x = x.mean(axis=(3, 5))                                           # (B,3,8,8)

    # ---- fold backbone 1x1 (3->256) with process_features 1x1 (256->32) ----
    # No nonlinearity between them, so W = Wb @ Wpf, b = bb @ Wpf + bpf is exact:
    # the 256-channel intermediate never exists.
    w_fused = jnp.dot(params["backbone_w"], params["pf_w"])           # (3, 32)
    b_fused = jnp.dot(params["backbone_b"], params["pf_w"]) + params["pf_b"]

    # lane-dense matmul: (Cout, Cin) @ (Cin, B*H*W) -> (32, 128)
    x_km = jnp.transpose(x, (1, 0, 2, 3)).reshape(3, B * FEAT_H * FEAT_W)
    f2d = fused_conv1x1_lane_dense(x_km, w_fused.T, b_fused)          # (32, B*H*W)
    f = jnp.transpose(f2d.reshape(PF_OUT, B, FEAT_H, FEAT_W), (1, 0, 2, 3))

    # ---- returned `features`: Upsample(nearest) + ConstantPad2d ----
    # (only produced as an output; the sampling path below reads the 8x8 map)
    features = jnp.pad(
        jnp.repeat(jnp.repeat(f, UP_H // FEAT_H, axis=2), UP_W // FEAT_W, axis=3),
        ((0, 0), (0, 0), (0, 0), (PAD_W, PAD_W)))                     # (B,32,16,20)

    if f.shape[0] < grid_coord_proj_batch.shape[0]:
        grid_coord_proj_batch = grid_coord_proj_batch[:f.shape[0]]

    # ---- bilinear tap gather (XLA gather glue) ----
    f00, f01, f10, f11, w00, w01, w10, w11 = gather_bilinear_taps(
        f, grid_coord_proj_batch)

    if f.shape[0] < coord_volumes.shape[0]:
        coord_volumes = coord_volumes[:f.shape[0]]

    # ---- with_scene=True, with_intersection=False: scene is one extra channel,
    # handled inside the fused kernel (no materialized concat) ----
    scene = scene_volumes.reshape(B, 1, N)
    coord_flat = coord_volumes.reshape(B, N, 3)      # per-batch coords (exact)

    # ---- volume_net (stand-in) ----
    # TODO(synk): full V2VModel encoder-decoder is not reproduced; stand-in =
    # 1x1x1 Conv3d (33 -> num_joints), fused below with the integration.
    wv = params["v2v_w"]                              # (33, J)
    wv_main = wv[:PF_OUT].T                           # (J, 32)
    wv_scene = wv[PF_OUT:].T                          # (J, 1)
    bv = params["v2v_b"].reshape(NUM_JOINTS, 1)

    # ---- fused unproject + V2V + integrate_tensor_3d_with_coordinates ----
    kp, probs = unproj_v2v_integrate_pallas(
        f00, f01, f10, f11, w00, w01, w10, w11, scene,
        wv_main, wv_scene, bv, coord_flat,
        VOLUME_MULTIPLIER, VOLUME_SOFTMAX)

    vol_keypoints_3d = kp                                             # (B, J, 3)
    volumes_out = probs.reshape(B, NUM_JOINTS, VOLUME_SIZE, VOLUME_SIZE,
                                VOLUME_SIZE)

    return vol_keypoints_3d, features, volumes_out, coord_volumes


# =====================  main  =====================

if __name__ == "__main__":
    key = jax.random.PRNGKey(0)
    k = jax.random.split(key, 8)

    params = {
        "backbone_w": 0.1 * jax.random.normal(k[0], (3, PF_IN), jnp.float32),
        "backbone_b": 0.1 * jax.random.normal(k[1], (PF_IN,), jnp.float32),
        "pf_w": 0.1 * jax.random.normal(k[2], (PF_IN, PF_OUT), jnp.float32),
        "pf_b": 0.1 * jax.random.normal(k[3], (PF_OUT,), jnp.float32),
        "v2v_w": 0.1 * jax.random.normal(k[4], (V2V_IN, NUM_JOINTS), jnp.float32),
        "v2v_b": 0.1 * jax.random.normal(k[5], (NUM_JOINTS,), jnp.float32),
    }

    images = jax.random.normal(k[6], (BATCH, 3, IMG_H, IMG_W), jnp.float32)
    scene_volumes = (jax.random.uniform(
        k[7], (BATCH, VOLUME_SIZE, VOLUME_SIZE, VOLUME_SIZE)) > 0.5).astype(jnp.float32)

    coord_volume = build_coord_volume(VOLUME_SIZE, CUBOID_SIDE)
    coord_volumes = jnp.broadcast_to(
        coord_volume[None], (BATCH,) + coord_volume.shape)
    grid_coord_proj_batch = synthetic_grid_coord_proj(
        coord_volume, BATCH, UP_H, UP_W + 2 * PAD_W)

    out = jax.jit(forward)(params, images, grid_coord_proj_batch,
                           coord_volumes, scene_volumes)
    out = jax.block_until_ready(out)

    kp, feats, vols, cv = out
    assert kp.shape == (BATCH, NUM_JOINTS, 3)
    assert feats.shape == (BATCH, PF_OUT, UP_H, UP_W + 2 * PAD_W)
    assert vols.shape == (BATCH, NUM_JOINTS, VOLUME_SIZE, VOLUME_SIZE, VOLUME_SIZE)
    assert cv.shape == (BATCH, VOLUME_SIZE, VOLUME_SIZE, VOLUME_SIZE, 3)
    assert bool(jnp.all(jnp.isfinite(kp)))
    print("KERNEL_OK")
</pallas_src>

<mosaic_0001>
module attributes {stable_mosaic.version = 11 : i64} {
  func.func @_matmul_bias_kernel(%arg0: i32, %arg1: memref<32x3xbf16, #tpu.memory_space<vmem>>, %arg2: memref<3x128xbf16, #tpu.memory_space<vmem>>, %arg3: memref<32x1xf32, #tpu.memory_space<vmem>>, %arg4: memref<32x128xf32, #tpu.memory_space<vmem>>) attributes {dimension_semantics = [#tpu.dimension_semantics<parallel>], iteration_bounds = array<i64: 1>, scalar_prefetch = 0 : i64, scratch_operands = 0 : i64, tpu.core_type = #tpu.core_type<tc>, window_params = [{pipeline_mode = #tpu.pipeline_mode<synchronous>, transform_indices = @transform_0, window_bounds = array<i64: 32, 3>}, {transform_indices = @transform_1, window_bounds = array<i64: 3, 128>}, {pipeline_mode = #tpu.pipeline_mode<synchronous>, transform_indices = @transform_2, window_bounds = array<i64: 32, 1>}, {transform_indices = @transform_3, window_bounds = array<i64: 32, 128>}]} {
    %c0 = arith.constant 0 : index
    %c0_0 = arith.constant 0 : index
    %0 = vector.load %arg1[%c0, %c0_0] : memref<32x3xbf16, #tpu.memory_space<vmem>>, vector<32x3xbf16>
    %c0_1 = arith.constant 0 : index
    %c0_2 = arith.constant 0 : index
    %1 = vector.load %arg2[%c0_1, %c0_2] : memref<3x128xbf16, #tpu.memory_space<vmem>>, vector<3x128xbf16>
    %cst = arith.constant dense<0.000000e+00> : vector<32x128xf32>
    %2 = tpu.matmul %0, %1, %cst {dimension_numbers = #tpu.dot_dimension_numbers<[1], [0], [0], [1], [0, 0, 1, 1], [], []>} : vector<32x3xbf16>, vector<3x128xbf16>, vector<32x128xf32> -> vector<32x128xf32>
    %c0_3 = arith.constant 0 : index
    %c0_4 = arith.constant 0 : index
    %3 = vector.load %arg3[%c0_3, %c0_4] : memref<32x1xf32, #tpu.memory_space<vmem>>, vector<32x1xf32>
    %4 = vector.broadcast %3 : vector<32x1xf32> to vector<32x128xf32>
    %5 = arith.addf %2, %4 : vector<32x128xf32>
    %c0_5 = arith.constant 0 : index
    %c0_6 = arith.constant 0 : index
    %6 = vector.load %arg4[%c0_5, %c0_6] : memref<32x128xf32, #tpu.memory_space<vmem>>, vector<32x128xf32>
    tpu.vector_store %arg4[%c0_5, %c0_6], %5 {strides = array<i32>} : memref<32x128xf32, #tpu.memory_space<vmem>>, vector<32x128xf32>,
    return
  }
  func.func @transform_0(%arg0: i32) -> (i32, i32) {
    %c0_i32 = arith.constant 0 : i32
    %c0_i32_0 = arith.constant 0 : i32
    %c0_i32_1 = arith.constant 0 : i32
    return %c0_i32, %c0_i32_0 : i32, i32
  }
  func.func @transform_1(%arg0: i32) -> (i32, i32) {
    %c0_i32 = arith.constant 0 : i32
    %c0_i32_0 = arith.constant 0 : i32
    return %c0_i32, %arg0 : i32, i32
  }
  func.func @transform_2(%arg0: i32) -> (i32, i32) {
    %c0_i32 = arith.constant 0 : i32
    %c0_i32_0 = arith.constant 0 : i32
    %c0_i32_1 = arith.constant 0 : i32
    return %c0_i32, %c0_i32_0 : i32, i32
  }
  func.func @transform_3(%arg0: i32) -> (i32, i32) {
    %c0_i32 = arith.constant 0 : i32
    %c0_i32_0 = arith.constant 0 : i32
    return %c0_i32, %arg0 : i32, i32
  }
}

module attributes {stable_mosaic.version = 11 : i64} {
  func.func @_unproj_v2v_integrate_kernel(%arg0: i32, %arg1: memref<1x32x512xf32, #tpu.memory_space<vmem>>, %arg2: memref<1x32x512xf32, #tpu.memory_space<vmem>>, %arg3: memref<1x32x512xf32, #tpu.memory_space<vmem>>, %arg4: memref<1x32x512xf32, #tpu.memory_space<vmem>>, %arg5: memref<1x1x512xf32, #tpu.memory_space<vmem>>, %arg6: memref<1x1x512xf32, #tpu.memory_space<vmem>>, %arg7: memref<1x1x512xf32, #tpu.memory_space<vmem>>, %arg8: memref<1x1x512xf32, #tpu.memory_space<vmem>>, %arg9: memref<1x1x512xf32, #tpu.memory_space<vmem>>, %arg10: memref<16x32xf32, #tpu.memory_space<vmem>>, %arg11: memref<16x1xf32, #tpu.memory_space<vmem>>, %arg12: memref<16x1xf32, #tpu.memory_space<vmem>>, %arg13: memref<1x512x3xf32, #tpu.memory_space<vmem>>, %arg14: memref<1x16x3xf32, #tpu.memory_space<vmem>>, %arg15: memref<1x16x512xf32, #tpu.memory_space<vmem>>) attributes {dimension_semantics = [#tpu.dimension_semantics<parallel>], iteration_bounds = array<i64: 2>, scalar_prefetch = 0 : i64, scratch_operands = 0 : i64, tpu.core_type = #tpu.core_type<tc>, window_params = [{transform_indices = @transform_0, window_bounds = array<i64: 1, 32, 512>}, {transform_indices = @transform_1, window_bounds = array<i64: 1, 32, 512>}, {transform_indices = @transform_2, window_bounds = array<i64: 1, 32, 512>}, {transform_indices = @transform_3, window_bounds = array<i64: 1, 32, 512>}, {transform_indices = @transform_4, window_bounds = array<i64: 1, 1, 512>}, {transform_indices = @transform_5, window_bounds = array<i64: 1, 1, 512>}, {transform_indices = @transform_6, window_bounds = array<i64: 1, 1, 512>}, {transform_indices = @transform_7, window_bounds = array<i64: 1, 1, 512>}, {transform_indices = @transform_8, window_bounds = array<i64: 1, 1, 512>}, {pipeline_mode = #tpu.pipeline_mode<synchronous>, transform_indices = @transform_9, window_bounds = array<i64: 16, 32>}, {pipeline_mode = #tpu.pipeline_mode<synchronous>, transform_indices = @transform_10, window_bounds = array<i64: 16, 1>}, {pipeline_mode = #tpu.pipeline_mode<synchronous>, transform_indices = @transform_11, window_bounds = array<i64: 16, 1>}, {transform_indices = @transform_12, window_bounds = array<i64: 1, 512, 3>}, {transform_indices = @transform_13, window_bounds = array<i64: 1, 16, 3>}, {transform_indices = @transform_14, window_bounds = array<i64: 1, 16, 512>}]} {
    %c0 = arith.constant 0 : index
    %c0_0 = arith.constant 0 : index
    %c0_1 = arith.constant 0 : index
    %0 = vector.load %arg1[%c0, %c0_0, %c0_1] : memref<1x32x512xf32, #tpu.memory_space<vmem>>, vector<1x32x512xf32>
    %1 = vector.shape_cast %0 : vector<1x32x512xf32> to vector<32x512xf32>
    %c0_2 = arith.constant 0 : index
    %c0_3 = arith.constant 0 : index
    %c0_4 = arith.constant 0 : index
    %2 = vector.load %arg5[%c0_2, %c0_3, %c0_4] : memref<1x1x512xf32, #tpu.memory_space<vmem>>, vector<1x1x512xf32>
    %3 = vector.shape_cast %2 : vector<1x1x512xf32> to vector<1x512xf32>
    %4 = vector.broadcast %3 : vector<1x512xf32> to vector<32x512xf32>
    %5 = arith.mulf %1, %4 : vector<32x512xf32>
    %c0_5 = arith.constant 0 : index
    %c0_6 = arith.constant 0 : index
    %c0_7 = arith.constant 0 : index
    %6 = vector.load %arg2[%c0_5, %c0_6, %c0_7] : memref<1x32x512xf32, #tpu.memory_space<vmem>>, vector<1x32x512xf32>
    %7 = vector.shape_cast %6 : vector<1x32x512xf32> to vector<32x512xf32>
    %c0_8 = arith.constant 0 : index
    %c0_9 = arith.constant 0 : index
    %c0_10 = arith.constant 0 : index
    %8 = vector.load %arg6[%c0_8, %c0_9, %c0_10] : memref<1x1x512xf32, #tpu.memory_space<vmem>>, vector<1x1x512xf32>
    %9 = vector.shape_cast %8 : vector<1x1x512xf32> to vector<1x512xf32>
    %10 = vector.broadcast %9 : vector<1x512xf32> to vector<32x512xf32>
    %11 = arith.mulf %7, %10 : vector<32x512xf32>
    %12 = arith.addf %5, %11 : vector<32x512xf32>
    %c0_11 = arith.constant 0 : index
    %c0_12 = arith.constant 0 : index
    %c0_13 = arith.constant 0 : index
    %13 = vector.load %arg3[%c0_11, %c0_12, %c0_13] : memref<1x32x512xf32, #tpu.memory_space<vmem>>, vector<1x32x512xf32>
    %14 = vector.shape_cast %13 : vector<1x32x512xf32> to vector<32x512xf32>
    %c0_14 = arith.constant 0 : index
    %c0_15 = arith.constant 0 : index
    %c0_16 = arith.constant 0 : index
    %15 = vector.load %arg7[%c0_14, %c0_15, %c0_16] : memref<1x1x512xf32, #tpu.memory_space<vmem>>, vector<1x1x512xf32>
    %16 = vector.shape_cast %15 : vector<1x1x512xf32> to vector<1x512xf32>
    %17 = vector.broadcast %16 : vector<1x512xf32> to vector<32x512xf32>
    %18 = arith.mulf %14, %17 : vector<32x512xf32>
    %19 = arith.addf %12, %18 : vector<32x512xf32>
    %c0_17 = arith.constant 0 : index
    %c0_18 = arith.constant 0 : index
    %c0_19 = arith.constant 0 : index
    %20 = vector.load %arg4[%c0_17, %c0_18, %c0_19] : memref<1x32x512xf32, #tpu.memory_space<vmem>>, vector<1x32x512xf32>
    %21 = vector.shape_cast %20 : vector<1x32x512xf32> to vector<32x512xf32>
    %c0_20 = arith.constant 0 : index
    %c0_21 = arith.constant 0 : index
    %c0_22 = arith.constant 0 : index
    %22 = vector.load %arg8[%c0_20, %c0_21, %c0_22] : memref<1x1x512xf32, #tpu.memory_space<vmem>>, vector<1x1x512xf32>
    %23 = vector.shape_cast %22 : vector<1x1x512xf32> to vector<1x512xf32>
    %24 = vector.broadcast %23 : vector<1x512xf32> to vector<32x512xf32>
    %25 = arith.mulf %21, %24 : vector<32x512xf32>
    %26 = arith.addf %19, %25 : vector<32x512xf32>
    %c0_23 = arith.constant 0 : index
    %c0_24 = arith.constant 0 : index
    %27 = vector.load %arg10[%c0_23, %c0_24] : memref<16x32xf32, #tpu.memory_space<vmem>>, vector<16x32xf32>
    %cst = arith.constant dense<0.000000e+00> : vector<16x512xf32>
    %28 = tpu.matmul %27, %26, %cst {dimension_numbers = #tpu.dot_dimension_numbers<[1], [0], [0], [1], [0, 0, 1, 1], [], []>} : vector<16x32xf32>, vector<32x512xf32>, vector<16x512xf32> -> vector<16x512xf32>
    %c0_25 = arith.constant 0 : index
    %c0_26 = arith.constant 0 : index
    %29 = vector.load %arg11[%c0_25, %c0_26] : memref<16x1xf32, #tpu.memory_space<vmem>>, vector<16x1xf32>
    %c0_27 = arith.constant 0 : index
    %c0_28 = arith.constant 0 : index
    %c0_29 = arith.constant 0 : index
    %30 = vector.load %arg9[%c0_27, %c0_28, %c0_29] : memref<1x1x512xf32, #tpu.memory_space<vmem>>, vector<1x1x512xf32>
    %31 = vector.shape_cast %30 : vector<1x1x512xf32> to vector<1x512xf32>
    %32 = vector.broadcast %29 : vector<16x1xf32> to vector<16x512xf32>
    %33 = vector.broadcast %31 : vector<1x512xf32> to vector<16x512xf32>
    %34 = arith.mulf %32, %33 : vector<16x512xf32>
    %35 = arith.addf %28, %34 : vector<16x512xf32>
    %c0_30 = arith.constant 0 : index
    %c0_31 = arith.constant 0 : index
    %36 = vector.load %arg12[%c0_30, %c0_31] : memref<16x1xf32, #tpu.memory_space<vmem>>, vector<16x1xf32>
    %37 = vector.broadcast %36 : vector<16x1xf32> to vector<16x512xf32>
    %38 = arith.addf %35, %37 : vector<16x512xf32>
    %cst_32 = arith.constant 1.000000e+00 : f32
    %39 = vector.broadcast %cst_32 : f32 to vector<16x512xf32>
    %40 = arith.mulf %38, %39 : vector<16x512xf32>
    %cst_33 = arith.constant dense<0xFF800000> : vector<16xf32>
    %41 = vector.multi_reduction <maximumf>, %40, %cst_33 [1] : vector<16x512xf32> to vector<16xf32>
    %42 = vector.shape_cast %41 : vector<16xf32> to vector<16x1xf32>
    %43 = vector.broadcast %42 : vector<16x1xf32> to vector<16x512xf32>
    %44 = arith.subf %40, %43 : vector<16x512xf32>
    %45 = math.exp %44 : vector<16x512xf32>
    %cst_34 = arith.constant dense<0.000000e+00> : vector<16xf32>
    %46 = vector.multi_reduction <add>, %45, %cst_34 [1] : vector<16x512xf32> to vector<16xf32>
    %47 = vector.shape_cast %46 : vector<16xf32> to vector<16x1xf32>
    %48 = tpu.reciprocal %47 {approx = true} : vector<16x1xf32> -> vector<16x1xf32>
    %49 = vector.broadcast %48 : vector<16x1xf32> to vector<16x512xf32>
    %50 = arith.mulf %45, %49 : vector<16x512xf32>
    %c0_35 = arith.constant 0 : index
    %c0_36 = arith.constant 0 : index
    %c0_37 = arith.constant 0 : index
    %51 = vector.load %arg15[%c0_35, %c0_36, %c0_37] : memref<1x16x512xf32, #tpu.memory_space<vmem>>, vector<1x16x512xf32>
    %52 = vector.shape_cast %51 : vector<1x16x512xf32> to vector<16x512xf32>
    %53 = vector.shape_cast %50 : vector<16x512xf32> to vector<1x16x512xf32>
    tpu.vector_store %arg15[%c0_35, %c0_36, %c0_37], %53 {strides = array<i32>} : memref<1x16x512xf32, #tpu.memory_space<vmem>>, vector<1x16x512xf32>,
    %c0_38 = arith.constant 0 : index
    %c0_39 = arith.constant 0 : index
    %c0_40 = arith.constant 0 : index
    %54 = vector.load %arg13[%c0_38, %c0_39, %c0_40] : memref<1x512x3xf32, #tpu.memory_space<vmem>>, vector<1x512x3xf32>
    %55 = vector.shape_cast %54 : vector<1x512x3xf32> to vector<512x3xf32>
    %cst_41 = arith.constant dense<0.000000e+00> : vector<16x3xf32>
    %56 = tpu.matmul %50, %55, %cst_41 {dimension_numbers = #tpu.dot_dimension_numbers<[1], [0], [0], [1], [0, 0, 1, 1], [], []>} : vector<16x512xf32>, vector<512x3xf32>, vector<16x3xf32> -> vector<16x3xf32>
    %c0_42 = arith.constant 0 : index
    %c0_43 = arith.constant 0 : index
    %c0_44 = arith.constant 0 : index
    %57 = vector.load %arg14[%c0_42, %c0_43, %c0_44] : memref<1x16x3xf32, #tpu.memory_space<vmem>>, vector<1x16x3xf32>
    %58 = vector.shape_cast %57 : vector<1x16x3xf32> to vector<16x3xf32>
    %59 = vector.shape_cast %56 : vector<16x3xf32> to vector<1x16x3xf32>
    tpu.vector_store %arg14[%c0_42, %c0_43, %c0_44], %59 {strides = array<i32>} : memref<1x16x3xf32, #tpu.memory_space<vmem>>, vector<1x16x3xf32>,
    return
  }
  func.func @transform_0(%arg0: i32) -> (i32, i32, i32) {
    %c0_i32 = arith.constant 0 : i32
    %c0_i32_0 = arith.constant 0 : i32
    %c0_i32_1 = arith.constant 0 : i32
    return %arg0, %c0_i32, %c0_i32_0 : i32, i32, i32
  }
  func.func @transform_1(%arg0: i32) -> (i32, i32, i32) {
    %c0_i32 = arith.constant 0 : i32
    %c0_i32_0 = arith.constant 0 : i32
    %c0_i32_1 = arith.constant 0 : i32
    return %arg0, %c0_i32, %c0_i32_0 : i32, i32, i32
  }
  func.func @transform_2(%arg0: i32) -> (i32, i32, i32) {
    %c0_i32 = arith.constant 0 : i32
    %c0_i32_0 = arith.constant 0 : i32
    %c0_i32_1 = arith.constant 0 : i32
    return %arg0, %c0_i32, %c0_i32_0 : i32, i32, i32
  }
  func.func @transform_3(%arg0: i32) -> (i32, i32, i32) {
    %c0_i32 = arith.constant 0 : i32
    %c0_i32_0 = arith.constant 0 : i32
    %c0_i32_1 = arith.constant 0 : i32
    return %arg0, %c0_i32, %c0_i32_0 : i32, i32, i32
  }
  func.func @transform_4(%arg0: i32) -> (i32, i32, i32) {
    %c0_i32 = arith.constant 0 : i32
    %c0_i32_0 = arith.constant 0 : i32
    %c0_i32_1 = arith.constant 0 : i32
    return %arg0, %c0_i32, %c0_i32_0 : i32, i32, i32
  }
  func.func @transform_5(%arg0: i32) -> (i32, i32, i32) {
    %c0_i32 = arith.constant 0 : i32
    %c0_i32_0 = arith.constant 0 : i32
    %c0_i32_1 = arith.constant 0 : i32
    return %arg0, %c0_i32, %c0_i32_0 : i32, i32, i32
  }
  func.func @transform_6(%arg0: i32) -> (i32, i32, i32) {
    %c0_i32 = arith.constant 0 : i32
    %c0_i32_0 = arith.constant 0 : i32
    %c0_i32_1 = arith.constant 0 : i32
    return %arg0, %c0_i32, %c0_i32_0 : i32, i32, i32
  }
  func.func @transform_7(%arg0: i32) -> (i32, i32, i32) {
    %c0_i32 = arith.constant 0 : i32
    %c0_i32_0 = arith.constant 0 : i32
    %c0_i32_1 = arith.constant 0 : i32
    return %arg0, %c0_i32, %c0_i32_0 : i32, i32, i32
  }
  func.func @transform_8(%arg0: i32) -> (i32, i32, i32) {
    %c0_i32 = arith.constant 0 : i32
    %c0_i32_0 = arith.constant 0 : i32
    %c0_i32_1 = arith.constant 0 : i32
    return %arg0, %c0_i32, %c0_i32_0 : i32, i32, i32
  }
  func.func @transform_9(%arg0: i32) -> (i32, i32) {
    %c0_i32 = arith.constant 0 : i32
    %c0_i32_0 = arith.constant 0 : i32
    %c0_i32_1 = arith.constant 0 : i32
    return %c0_i32, %c0_i32_0 : i32, i32
  }
  func.func @transform_10(%arg0: i32) -> (i32, i32) {
    %c0_i32 = arith.constant 0 : i32
    %c0_i32_0 = arith.constant 0 : i32
    %c0_i32_1 = arith.constant 0 : i32
    return %c0_i32, %c0_i32_0 : i32, i32
  }
  func.func @transform_11(%arg0: i32) -> (i32, i32) {
    %c0_i32 = arith.constant 0 : i32
    %c0_i32_0 = arith.constant 0 : i32
    %c0_i32_1 = arith.constant 0 : i32
    return %c0_i32, %c0_i32_0 : i32, i32
  }
  func.func @transform_12(%arg0: i32) -> (i32, i32, i32) {
    %c0_i32 = arith.constant 0 : i32
    %c0_i32_0 = arith.constant 0 : i32
    %c0_i32_1 = arith.constant 0 : i32
    return %arg0, %c0_i32, %c0_i32_0 : i32, i32, i32
  }
  func.func @transform_13(%arg0: i32) -> (i32, i32, i32) {
    %c0_i32 = arith.constant 0 : i32
    %c0_i32_0 = arith.constant 0 : i32
    %c0_i32_1 = arith.constant 0 : i32
    return %arg0, %c0_i32, %c0_i32_0 : i32, i32, i32
  }
  func.func @transform_14(%arg0: i32) -> (i32, i32, i32) {
    %c0_i32 = arith.constant 0 : i32
    %c0_i32_0 = arith.constant 0 : i32
    %c0_i32_1 = arith.constant 0 : i32
    return %arg0, %c0_i32, %c0_i32_0 : i32, i32, i32
  }
}

</mosaic_0001>

<bundles_post_ra>
// kernel: forward.2
= control target key start
LH: loop header
LB: loop body
LE: loop exit
PB: predicated region body
PF: predicated region fallthrough
CT: control target
= control target key end

     0   :  { %vm61_vm0 = vcmask 1040384   ;;  %vm62_vm1 = vcmask 1041408   ;;  %vm54_vm2 = vcmask 23552   ;;  %v144_v1 = vmov 65535   ;;  %s201_s1 = inlined_call_operand.vmem [shape: bf16[3,128], index: 1, kind: input, shape index: {}]   ;;  %s202_s0 = inlined_call_operand.vmem [shape: bf16[32,3], index: 0, kind: input, shape index: {}]   ;;  %s203_s2 = inlined_call_operand.vmem [shape: f32[32,1], index: 2, kind: input, shape index: {}]   ;;  %s204_s3 = inlined_call_operand.vmem [shape: f32[32,128], index: 3, kind: output, shape index: {}]  }
   0x1   :  { %v19_v0 = vld [vmem:[%s201_s1] sm:$0x3]  ;;  %v63_v2 = vsel %vm61_vm0, 4294967295, %v144_v1  ;;  %v22_v6 = vld [vmem:[%s203_s2 + $0x10] sm:$0xff]  ;;  %v145_v8 = vmov 0   ;;  %v143_v9 = vld [vmem:[%s202_s0 + $0x8] sm:$0xff]  }
   0x2   :  { %v142_v3 = vld [vmem:[%s202_s0] sm:$0xff]   ;;  %v64_v4 = vsel %vm62_vm1, %v63_v2, 0  ;;  %141 = vset.pattern.permute.xlu1 %v145_v8  ;;  %140 = vset.pattern.permute.xlu0 %v145_v8  ;;  %v23_v10 = vld [vmem:[%s203_s2 + $0x18] sm:$0xff]  ;;  %v21_v11 = vld [vmem:[%s203_s2 + $0x8] sm:$0xff] }
   0x3   :  { %v66_v5 = vand.u32 %v64_v4, %v19_v0  ;;  %134 = vmatprep.mubr.msk.bf16.mxu0 %vm54_vm2, %v142_v3  ;;  %v20_v7 = vld [vmem:[%s203_s2] sm:$0xff]  ;;  %36 = vperm.xlu1 %141, %v22_v6  }
   0x4   :  { %26 = vperm.xlu0 %140, %v20_v7  }
   0x5   :  { %132 = vmatprep.subr.bf16.mxu0 %v66_v5 }
   0x6   :  { %133 = vmatpush3.bf16.msra.mxu0 %v66_v5 }
   0x7   :  { %41 = vperm.xlu1 %141, %v23_v10  }
   0x8   :  { %31 = vperm.xlu0 %140, %v21_v11  }
   0x9   :  { %135 = vmatmul.mubr.msk.bf16.vlgmr.msra.gmra.mrb[0].mxu0 %vm54_vm2, %v143_v9 }
  0x82   :  { %v37_v12 = vpop.permute.xlu1 %36 }
  0x83   :  { %v27_v13 = vpop.permute.xlu0 %26 }
  0x86   :  { %v42_v17 = vpop.permute.xlu1 %41 }
  0x87   :  { %v32_v20 = vpop.permute.xlu0 %31 }
  0xdc   :  { %v136_v14 = vpop.f32.mrb[0].mxu0 }
  0xdd   :  { %v111_v15 = vadd.f32 %v136_v14, %v37_v12  ;;  %v102_v16 = vpop.f32.mrb[1].mxu0 }
  0xde   :  { %v103_v18 = vadd.f32 %v102_v16, %v27_v13  ;;  %v137_v19 = vpop.f32.mrb[2].mxu0 }
  0xdf   :  { %119 = vst [vmem:[%s204_s3 + $0x10] sm:$0xff] %v111_v15  ;;  %v114_v21 = vadd.f32 %v137_v19, %v42_v17  ;;  %v105_v22 = vpop.f32.mrb[3].mxu0 }
  0xe0   :  { %117 = vst [vmem:[%s204_s3] sm:$0xff] %v103_v18  ;;  %v106_v23 = vadd.f32 %v105_v22, %v32_v20 }
  0xe1   :  { %120 = vst [vmem:[%s204_s3 + $0x18] sm:$0xff] %v114_v21 }
  0xe2   :  { %118 = vst [vmem:[%s204_s3 + $0x8] sm:$0xff] %v106_v23 }

// kernel: forward.3
= control target key start
LH: loop header
LB: loop body
LE: loop exit
PB: predicated region body
PF: predicated region fallthrough
CT: control target
= control target key end

     0   :  { %s1920_s29 = smov 0   ;;  %s2353_s0 = inlined_call_operand.vmem [shape: f32[2,32,512], index: 0, kind: input, shape index: {}]   ;;  %s2354_s1 = inlined_call_operand.vmem [shape: f32[2,32,512], index: 1, kind: input, shape index: {}]   ;;  %s2355_s2 = inlined_call_operand.vmem [shape: f32[2,32,512], index: 2, kind: input, shape index: {}]   ;;  %s2356_s3 = inlined_call_operand.vmem [shape: f32[2,32,512], index: 3, kind: input, shape index: {}]   ;;  %s2357_s4 = inlined_call_operand.vmem [shape: f32[2,1,512], index: 4, kind: input, shape index: {}]   ;;  %s2358_s5 = inlined_call_operand.vmem [shape: f32[2,1,512], index: 5, kind: input, shape index: {}]   ;;  %s2359_s6 = inlined_call_operand.vmem [shape: f32[2,1,512], index: 6, kind: input, shape index: {}]   ;;  %s2360_s7 = inlined_call_operand.vmem [shape: f32[2,1,512], index: 7, kind: input, shape index: {}]   ;;  %s2361_s8 = inlined_call_operand.vmem [shape: f32[2,1,512], index: 8, kind: input, shape index: {}]   ;;  %s2362_s9 = inlined_call_operand.vmem [shape: f32[16,32], index: 9, kind: input, shape index: {}]   ;;  %s2363_s10 = inlined_call_operand.vmem [shape: f32[16,1], index: 10, kind: input, shape index: {}]   ;;  %s2364_s11 = inlined_call_operand.vmem [shape: f32[16,1], index: 11, kind: input, shape index: {}]   ;;  %s2365_s12 = inlined_call_operand.vmem [shape: f32[2,512,3], index: 12, kind: input, shape index: {}]   ;;  %s2366_s13 = inlined_call_operand.vmem [shape: f32[2,16,3], index: 13, kind: output, shape index: {0}]   ;;  %s2367_s14 = inlined_call_operand.vmem [shape: f32[2,16,512], index: 14, kind: output, shape index: {1}]  }
   0x1   :  { %2368 = sst [smem:[#allocation2_spill]] %s2353_s0 }
   0x2 LB: > { %s1610_s30 = sadd.s32 4294967295, %s1841_s29   ;;  %p1614_p0 = scmp.ge.s32.totalorder %s1841_s29, 1  ;;  %s1841_s29 = sphi %s1920_s29, %s25_s29  }
   0x3   : > { %p500_p1 = scmp.lt.s32.totalorder %s1841_s29, 3 }
   0x5   : > { %p501_p2 = pnand %p1614_p0, %p500_p1 }
   0x6   : > { %p591_p3 = scmp.lt.s32.totalorder (!%p501_p2), %s1610_s30, 1  ;;  %v664_v0 = vlaneseq (!%p501_p2)  ;;  %v1843_v1 = vmov (!%p501_p2), 0.0   ;;  %v912_v2 = vld [vmem:[%s2363_s10] sm:$0xff] (!%p501_p2)  ;;  %v1844_v5 = vmov (!%p501_p2), 0   ;;  %v913_v6 = vld [vmem:[%s2363_s10 + $0x8] sm:$0xff] (!%p501_p2)  ;;  %s2369_s0 = sld [smem:[#allocation2_spill]] (!%p501_p2) }
   0x7   : > { %504 = sbr.rel (%p501_p2) target bundleno = 826 (0x33a), region = 72  ;;  %1025 = vmatprep.mubr.f32.mxu0 (!%p501_p2), %v1843_v1  ;;  %1102 = vmatprep.mubr.f32.mxu1 (!%p501_p2), %v1843_v1  ;;  %v1115_v3 = vld [vmem:[%s2364_s11] sm:$0xff] (!%p501_p2)  ;;  %v1116_v7 = vld [vmem:[%s2364_s11 + $0x8] sm:$0xff] (!%p501_p2)  ;;  %vm954_vm0 = vcmask (!%p501_p2), 261120   ;;  %vm1411_vm1 = vcmask (!%p501_p2), 23552  }
   0x8   : > { %v665_v4 = vshrl.u32 (!%p501_p2), %v664_v0, 7  ;;  %1813 = vset.pattern.permute.xlu0 (!%p501_p2), %v1844_v5  ;;  %1814 = vset.pattern.permute.xlu1 (!%p501_p2), %v1844_v5 }
   0x9   : > { %917 = vperm.xlu0 (!%p501_p2), %1813, %v912_v2   ;;  %1119 = vperm.xlu1 (!%p501_p2), %1814, %v1115_v3  }
   0xa   : > { %v1958_v8 = vsub.s32 (!%p501_p2), 1, %v665_v4  ;;  %v1960_v9 = vsub.s32 (!%p501_p2), 3, %v665_v4  ;;  %v1986_v16 = vsub.s32 (!%p501_p2), 0, %v665_v4  ;;  %v2001_v20 = vsub.s32 (!%p501_p2), 2, %v665_v4 }
   0xd   : > { %922 = vperm.xlu0 (!%p501_p2), %1813, %v913_v6   ;;  %1124 = vperm.xlu1 (!%p501_p2), %1814, %v1116_v7  }
   0xe   : > { %s2371_s30 = smov (!%p591_p3, %s1610_s30), 1 }
   0xf   : > { %s1640_s19 = sshll.u32 %s2371_s30, 7  ;;  %s1940_s20 = sshll.u32 %s2371_s30, 2 }
  0x10   : > { %s1951_s27 = scalar_lea.vmem %s2369_s0, %s1640_s19  ;;  %s1956_s16 = scalar_lea.vmem %s2354_s1, %s1640_s19 }
  0x11   : > { %s1965_s21 = scalar_lea.vmem %s2355_s2, %s1640_s19  ;;  %s1970_s24 = scalar_lea.vmem %s2356_s3, %s1640_s19  ;;  %v647_v10 = vld [vmem:[%s1951_s27 + $0x8] sm:$0xff]  ;;  %v649_v30 = vld [vmem:[%s1951_s27 + $0x18] sm:$0xff]  ;;  %v646_v60 = vld [vmem:[%s1951_s27] sm:$0xff] }
  0x12   : > { %v651_v11 = vld [vmem:[%s1951_s27 + $0x28] sm:$0xff]  ;;  %s614_s28 = scalar_lea.vmem %s2357_s4, %s1940_s20  ;;  %s618_s17 = scalar_lea.vmem %s2358_s5, %s1940_s20  ;;  %v653_v31 = vld [vmem:[%s1951_s27 + $0x38] sm:$0xff]  ;;  %v650_v61 = vld [vmem:[%s1951_s27 + $0x20] sm:$0xff] }
  0x13   : > { %v701_v12 = vld [vmem:[%s1956_s16 + $0x8] sm:$0xff]  ;;  %s622_s22 = scalar_lea.vmem %s2359_s6, %s1940_s20  ;;  %s626_s26 = scalar_lea.vmem %s2360_s7, %s1940_s20  ;;  %v1996_v17 = vld [vmem:[%s614_s28] sm:$0xf]  ;;  %v703_v32 = vld [vmem:[%s1956_s16 + $0x18] sm:$0xff] }
  0x14   : > { %v705_v13 = vld [vmem:[%s1956_s16 + $0x28] sm:$0xff]  ;;  %v1998_v18 = vld [vmem:[%s618_s17] sm:$0xf]  ;;  %v2005_v21 = vrot.slane %v1996_v17, %v1958_v8  ;;  %v2018_v26 = vrot.slane %v1996_v17, %v1960_v9  ;;  %v707_v39 = vld [vmem:[%s1956_s16 + $0x38] sm:$0xff]  ;;  %v2068_v0 = vrot.slane %v1996_v17, %v1986_v16  ;;  %s630_s15 = scalar_lea.vmem %s2361_s8, %s1940_s20  ;;  %s1645_s0 = sshll.u32 %s2371_s30, 4 }
  0x15   : > { %v771_v14 = vld [vmem:[%s1965_s21 + $0x8] sm:$0xff]  ;;  %v2009_v22 = vrot.slane %v1998_v18, %v1958_v8  ;;  %v2011_v23 = vld [vmem:[%s622_s22] sm:$0xf]  ;;  %v2022_v27 = vrot.slane %v1998_v18, %v1960_v9  ;;  %v773_v40 = vld [vmem:[%s1965_s21 + $0x18] sm:$0xff]  ;;  %v2074_v4 = vrot.slane %v1998_v18, %v1986_v16  ;;  %s1646_s22 = sshll.u32 %s2371_s30, 6  ;;  %s640_s20 = scalar_lea.vmem %s2366_s13, %s1645_s0 }
  0x16   : > { %v775_v15 = vld [vmem:[%s1965_s21 + $0x28] sm:$0xff]  ;;  %v2014_v25 = vld [vmem:[%s626_s26] sm:$0xf]  ;;  %v2026_v28 = vrot.slane %v2011_v23, %v1958_v8  ;;  %v2037_v33 = vrot.slane %v2011_v23, %v1960_v9  ;;  %v685_v35 = vmul.f32 %v2005_v21, %v647_v10  ;;  %v689_v36 = vmul.f32 %v2005_v21, %v651_v11  ;;  %v777_v41 = vld [vmem:[%s1965_s21 + $0x38] sm:$0xff]  ;;  %s645_s26 = scalar_lea.vmem %s2367_s14, %s1646_s22 }
  0x17   : > { %v841_v19 = vld [vmem:[%s1970_s24 + $0x8] sm:$0xff]  ;;  %v2030_v29 = vrot.slane %v2014_v25, %v1958_v8  ;;  %v2041_v34 = vrot.slane %v2014_v25, %v1960_v9  ;;  %v739_v37 = vmul.f32 %v2009_v22, %v701_v12  ;;  %v743_v38 = vmul.f32 %v2009_v22, %v705_v13  ;;  %v843_v46 = vld [vmem:[%s1970_s24 + $0x18] sm:$0xff]  ;;  %v700_v2 = vld [vmem:[%s1956_s16] sm:$0xff] }
  0x18   : > { %v845_v24 = vld [vmem:[%s1970_s24 + $0x28] sm:$0xff]  ;;  %v809_v42 = vmul.f32 %v2026_v28, %v771_v14  ;;  %v813_v43 = vmul.f32 %v2026_v28, %v775_v15  ;;  %v847_v47 = vld [vmem:[%s1970_s24 + $0x38] sm:$0xff]  ;;  %v687_v50 = vmul.f32 %v2018_v26, %v649_v30  ;;  %v691_v51 = vmul.f32 %v2018_v26, %v653_v31  ;;  %v704_v3 = vld [vmem:[%s1956_s16 + $0x20] sm:$0xff] }
  0x19   : > { %v879_v44 = vmul.f32 %v2030_v29, %v841_v19  ;;  %v883_v45 = vmul.f32 %v2030_v29, %v845_v24  ;;  %v755_v48 = vadd.f32 %v739_v37, %v685_v35  ;;  %v759_v49 = vadd.f32 %v743_v38, %v689_v36  ;;  %v770_v5 = vld [vmem:[%s1965_s21] sm:$0xff] }
  0x1a   : > { %v741_v52 = vmul.f32 %v2022_v27, %v703_v32  ;;  %v745_v53 = vmul.f32 %v2022_v27, %v707_v39  ;;  %v811_v54 = vmul.f32 %v2037_v33, %v773_v40  ;;  %v815_v55 = vmul.f32 %v2037_v33, %v777_v41  ;;  %v774_v10 = vld [vmem:[%s1965_s21 + $0x20] sm:$0xff]  ;;  %v648_v41 = vld [vmem:[%s1951_s27 + $0x10] sm:$0xff] }
  0x1b   : > { %v825_v56 = vadd.f32 %v809_v42, %v755_v48  ;;  %v829_v57 = vadd.f32 %v813_v43, %v759_v49  ;;  %v881_v58 = vmul.f32 %v2041_v34, %v843_v46  ;;  %v885_v59 = vmul.f32 %v2041_v34, %v847_v47  ;;  %v840_v12 = vld [vmem:[%s1970_s24] sm:$0xff]  ;;  %v652_v42 = vld [vmem:[%s1951_s27 + $0x30] sm:$0xff] }
  0x1c   : > { %v757_v62 = vadd.f32 %v741_v52, %v687_v50  ;;  %v761_v63 = vadd.f32 %v745_v53, %v691_v51  ;;  %v2080_v11 = vrot.slane %v2011_v23, %v1986_v16  ;;  %v2085_v13 = vrot.slane %v2014_v25, %v1986_v16  ;;  %v844_v30 = vld [vmem:[%s1970_s24 + $0x20] sm:$0xff]  ;;  %v702_v43 = vld [vmem:[%s1956_s16 + $0x10] sm:$0xff] }
  0x1d   : > { %v895_v6 = vadd.f32 %v879_v44, %v825_v56  ;;  %v899_v7 = vadd.f32 %v883_v45, %v829_v57  ;;  %v684_v19 = vmul.f32 %v2068_v0, %v646_v60  ;;  %v688_v24 = vmul.f32 %v2068_v0, %v650_v61  ;;  %v706_v48 = vld [vmem:[%s1956_s16 + $0x30] sm:$0xff]  ;;  %v659_v60 = vld [vmem:[%s1951_s27 + $0x68] sm:$0xff] }
  0x1e   : > { %v827_v14 = vadd.f32 %v811_v54, %v757_v62  ;;  %v831_v15 = vadd.f32 %v815_v55, %v761_v63  ;;  %v738_v32 = vmul.f32 %v2074_v4, %v700_v2  ;;  %v742_v35 = vmul.f32 %v2074_v4, %v704_v3  ;;  %v772_v49 = vld [vmem:[%s1965_s21 + $0x10] sm:$0xff]  ;;  %v709_v63 = vld [vmem:[%s1956_s16 + $0x48] sm:$0xff] }
  0x1f   : > { %v1723_v31 = vpack.c.bf16 %v899_v7, %v895_v6  ;;  %v808_v36 = vmul.f32 %v2080_v11, %v770_v5  ;;  %v812_v39 = vmul.f32 %v2080_v11, %v774_v10  ;;  %v878_v40 = vmul.f32 %v2085_v13, %v840_v12  ;;  %v776_v50 = vld [vmem:[%s1965_s21 + $0x30] sm:$0xff]  ;;  %v713_v2 = vld [vmem:[%s1956_s16 + $0x68] sm:$0xff] }
  0x20   : > { %v897_v37 = vadd.f32 %v881_v58, %v827_v14  ;;  %v901_v38 = vadd.f32 %v885_v59, %v831_v15  ;;  %v754_v44 = vadd.f32 %v738_v32, %v684_v19  ;;  %v758_v45 = vadd.f32 %v742_v35, %v688_v24  ;;  %v842_v54 = vld [vmem:[%s1970_s24 + $0x10] sm:$0xff]  ;;  %v655_v59 = vld [vmem:[%s1951_s27 + $0x48] sm:$0xff]  ;;  %v657_v32 = vld [vmem:[%s1951_s27 + $0x58] sm:$0xff] }
  0x21   : > { %1724 = vmatprep.subr.bf16.mxu0 %v1723_v31  ;;  %v882_v46 = vmul.f32 %v2085_v13, %v844_v30  ;;  %v2101_v47 = vrot.slane %v1996_v17, %v2001_v20  ;;  %v2108_v52 = vrot.slane %v1998_v18, %v2001_v20  ;;  %v2112_v53 = vrot.slane %v2011_v23, %v2001_v20  ;;  %v846_v55 = vld [vmem:[%s1970_s24 + $0x30] sm:$0xff]  ;;  %v779_v3 = vld [vmem:[%s1965_s21 + $0x48] sm:$0xff] }
  0x22   : > { %v1731_v51 = vpack.c.bf16 %v901_v38, %v897_v37  ;;  %v2118_v17 = vrot.slane %v2014_v25, %v2001_v20  ;;  %v824_v56 = vadd.f32 %v808_v36, %v754_v44  ;;  %v828_v57 = vadd.f32 %v812_v39, %v758_v45  ;;  %v783_v12 = vld [vmem:[%s1965_s21 + $0x68] sm:$0xff]  ;;  %v661_v39 = vld [vmem:[%s1951_s27 + $0x78] sm:$0xff] }
  0x23   : > { %v686_v58 = vmul.f32 %v2101_v47, %v648_v41  ;;  %v690_v18 = vmul.f32 %v2101_v47, %v652_v42  ;;  %v740_v23 = vmul.f32 %v2108_v52, %v702_v43  ;;  %v744_v61 = vmul.f32 %v2108_v52, %v706_v48  ;;  %v849_v14 = vld [vmem:[%s1970_s24 + $0x48] sm:$0xff]  ;;  %v715_v44 = vld [vmem:[%s1956_s16 + $0x78] sm:$0xff] }
  0x24   : > { %1732 = vmatprep.subr.bf16.mxu1 %v1731_v51  ;;  %v810_v62 = vmul.f32 %v2112_v53, %v772_v49  ;;  %v814_v25 = vmul.f32 %v2112_v53, %v776_v50  ;;  %v894_v5 = vadd.f32 %v878_v40, %v824_v56  ;;  %v898_v6 = vadd.f32 %v882_v46, %v828_v57  ;;  %v853_v31 = vld [vmem:[%s1970_s24 + $0x68] sm:$0xff]  ;;  %v711_v40 = vld [vmem:[%s1956_s16 + $0x58] sm:$0xff] }
  0x25   : > { %v880_v7 = vmul.f32 %v2118_v17, %v842_v54  ;;  %v884_v10 = vmul.f32 %v2118_v17, %v846_v55  ;;  %v756_v15 = vadd.f32 %v740_v23, %v686_v58  ;;  %v760_v19 = vadd.f32 %v744_v61, %v690_v18  ;;  %v781_v45 = vld [vmem:[%s1965_s21 + $0x58] sm:$0xff]  ;;  %v658_v23 = vld [vmem:[%s1951_s27 + $0x60] sm:$0xff] }
  0x26   : > { %v693_v24 = vmul.f32 %v2005_v21, %v655_v59  ;;  %v697_v30 = vmul.f32 %v2005_v21, %v659_v60  ;;  %v1725_v35 = vpack.c.bf16 %v898_v6, %v894_v5  ;;  %v747_v36 = vmul.f32 %v2009_v22, %v709_v63  ;;  %v785_v50 = vld [vmem:[%s1965_s21 + $0x78] sm:$0xff]  ;;  %v654_v60 = vld [vmem:[%s1951_s27 + $0x40] sm:$0xff] }
  0x27   : > { %v751_v37 = vmul.f32 %v2009_v22, %v713_v2  ;;  %v817_v38 = vmul.f32 %v2026_v28, %v779_v3  ;;  %v826_v41 = vadd.f32 %v810_v62, %v756_v15  ;;  %v830_v42 = vadd.f32 %v814_v25, %v760_v19  ;;  %v851_v51 = vld [vmem:[%s1970_s24 + $0x58] sm:$0xff]  ;;  %v708_v61 = vld [vmem:[%s1956_s16 + $0x40] sm:$0xff] }
  0x28   : > { %v821_v43 = vmul.f32 %v2026_v28, %v783_v12  ;;  %v887_v21 = vmul.f32 %v2030_v29, %v849_v14  ;;  %1726 = vmatpush1.bf16.msra.mxu0 %v1725_v35  ;;  %v763_v46 = vadd.f32 %v747_v36, %v693_v24  ;;  %v891_v22 = vmul.f32 %v2030_v29, %v853_v31  ;;  %v855_v57 = vld [vmem:[%s1970_s24 + $0x78] sm:$0xff]  ;;  %v712_v2 = vld [vmem:[%s1956_s16 + $0x60] sm:$0xff]  ;;  %v660_v36 = vld [vmem:[%s1951_s27 + $0x70] sm:$0xff] }
  0x29   : > { %v767_v48 = vadd.f32 %v751_v37, %v697_v30  ;;  %v695_v49 = vmul.f32 %v2018_v26, %v657_v32  ;;  %v896_v54 = vadd.f32 %v880_v7, %v826_v41  ;;  %v900_v55 = vadd.f32 %v884_v10, %v830_v42  ;;  %v778_v3 = vld [vmem:[%s1965_s21 + $0x40] sm:$0xff]  ;;  %v656_v30 = vld [vmem:[%s1951_s27 + $0x50] sm:$0xff] }
  0x2a   : > { %v699_v28 = vmul.f32 %v2018_v26, %v661_v39  ;;  %v749_v56 = vmul.f32 %v2022_v27, %v711_v40  ;;  %v833_v58 = vadd.f32 %v817_v38, %v763_v46  ;;  %v753_v59 = vmul.f32 %v2022_v27, %v715_v44  ;;  %v782_v10 = vld [vmem:[%s1965_s21 + $0x60] sm:$0xff]  ;;  %v710_v37 = vld [vmem:[%s1956_s16 + $0x50] sm:$0xff] }
  0x2b   : > { %v837_v18 = vadd.f32 %v821_v43, %v767_v48  ;;  %v819_v29 = vmul.f32 %v2037_v33, %v781_v45  ;;  %v1733_v62 = vpack.c.bf16 %v900_v55, %v896_v54  ;;  %v823_v63 = vmul.f32 %v2037_v33, %v785_v50  ;;  %v848_v12 = vld [vmem:[%s1970_s24 + $0x40] sm:$0xff]  ;;  %v714_v38 = vld [vmem:[%s1956_s16 + $0x70] sm:$0xff] }
  0x2c   : > { %v765_v25 = vadd.f32 %v749_v56, %v695_v49  ;;  %v889_v26 = vmul.f32 %v2041_v34, %v851_v51  ;;  %v903_v5 = vadd.f32 %v887_v21, %v833_v58  ;;  %v769_v27 = vadd.f32 %v753_v59, %v699_v28  ;;  %v852_v24 = vld [vmem:[%s1970_s24 + $0x60] sm:$0xff]  ;;  %v780_v42 = vld [vmem:[%s1965_s21 + $0x50] sm:$0xff] }
  0x2d   : > { %v907_v6 = vadd.f32 %v891_v22, %v837_v18  ;;  %v893_v7 = vmul.f32 %v2041_v34, %v855_v57  ;;  %1734 = vmatpush1.bf16.msra.mxu1 %v1733_v62  ;;  %v692_v33 = vmul.f32 %v2068_v0, %v654_v60  ;;  %v696_v15 = vmul.f32 %v2068_v0, %v658_v23  ;;  %v784_v43 = vld [vmem:[%s1965_s21 + $0x70] sm:$0xff]  ;;  %v914_v51 = vld [vmem:[%s630_s15] sm:$0xf] }
  0x2e   : > { %v835_v14 = vadd.f32 %v819_v29, %v765_v25  ;;  %v746_v19 = vmul.f32 %v2074_v4, %v708_v61  ;;  %v839_v32 = vadd.f32 %v823_v63, %v769_v27  ;;  %v750_v34 = vmul.f32 %v2074_v4, %v712_v2  ;;  %v850_v46 = vld [vmem:[%s1970_s24 + $0x50] sm:$0xff] }
  0x2f   : > { %v1727_v31 = vpack.c.bf16 %v907_v6, %v903_v5  ;;  %v816_v35 = vmul.f32 %v2080_v11, %v778_v3  ;;  %v820_v40 = vmul.f32 %v2080_v11, %v782_v10  ;;  %v886_v41 = vmul.f32 %v2085_v13, %v848_v12  ;;  %v854_v11 = vld [vmem:[%s1970_s24 + $0x70] sm:$0xff]  ;;  %s1644_s24 = sshll.u32 %s2371_s30, 9 }
  0x30   : > { %v905_v0 = vadd.f32 %v889_v26, %v835_v14  ;;  %v762_v39 = vadd.f32 %v746_v19, %v692_v33  ;;  %v909_v4 = vadd.f32 %v893_v7, %v839_v32  ;;  %v766_v21 = vadd.f32 %v750_v34, %v696_v15  ;;  %s2236_s18 = scalar_lea.vmem %s2365_s12, %s1644_s24 }
  0x31   : > { %1728 = vmatprep.subr.bf16.mxu0 %v1727_v31  ;;  %v890_v44 = vmul.f32 %v2085_v13, %v852_v24  ;;  %v694_v45 = vmul.f32 %v2101_v47, %v656_v30  ;;  %v698_v22 = vmul.f32 %v2101_v47, %v660_v36  ;;  %v748_v49 = vmul.f32 %v2108_v52, %v710_v37 }
  0x32   : > { %v832_v48 = vadd.f32 %v816_v35, %v762_v39  ;;  %v752_v50 = vmul.f32 %v2108_v52, %v714_v38  ;;  %v1735_v54 = vpack.c.bf16 %v909_v4, %v905_v0  ;;  %v836_v55 = vadd.f32 %v820_v40, %v766_v21 }
  0x33   : > { %v818_v28 = vmul.f32 %v2112_v53, %v780_v42  ;;  %v822_v56 = vmul.f32 %v2112_v53, %v784_v43  ;;  %v764_v13 = vadd.f32 %v748_v49, %v694_v45  ;;  %v888_v18 = vmul.f32 %v2118_v17, %v850_v46  ;;  %v910_v53 = vld [vmem:[%s2362_s9] sm:$0xff] }
  0x34   : > { %v902_v57 = vadd.f32 %v886_v41, %v832_v48  ;;  %v768_v58 = vadd.f32 %v752_v50, %v698_v22  ;;  %1736 = vmatprep.subr.bf16.mxu1 %v1735_v54  ;;  %v906_v59 = vadd.f32 %v890_v44, %v836_v55  ;;  %v892_v47 = vmul.f32 %v2118_v17, %v854_v11  ;;  %v1213_v54 = vld [vmem:[%s2236_s18 + $0x80] sm:$0xff]  ;;  %v1214_v55 = vld [vmem:[%s2236_s18 + $0x88] sm:$0xff] }
  0x35   : > { %v929_v29 = vrot.slane %v914_v51, %v1986_v16  ;;  %v834_v52 = vadd.f32 %v818_v28, %v764_v13  ;;  %v911_v16 = vld [vmem:[%s2362_s9 + $0x8] sm:$0xff]  ;;  %v933_v63 = vrot.slane %v914_v51, %v1958_v8  ;;  %v937_v26 = vrot.slane %v914_v51, %v2001_v20  ;;  %v1245_v28 = vld [vmem:[%s2236_s18 + $0x180] sm:$0xff] }
  0x36   : > { %v838_v60 = vadd.f32 %v822_v56, %v768_v58  ;;  %v1729_v23 = vpack.c.bf16 %v906_v59, %v902_v57  ;;  %v941_v3 = vrot.slane %v914_v51, %v1960_v9  ;;  %v1739_v56 = vpack.c.bf16 %v1214_v55, %v1213_v54  ;;  %v1246_v57 = vld [vmem:[%s2236_s18 + $0x188] sm:$0xff]  ;;  %v1197_v13 = vld [vmem:[%s2236_s18] sm:$0xff] }
  0x37   : > { %v904_v61 = vadd.f32 %v888_v18, %v834_v52  ;;  %v1198_v58 = vld [vmem:[%s2236_s18 + $0x8] sm:$0xff]  ;;  %v1771_v18 = vpack.c.bf16 %v1246_v57, %v1245_v28  ;;  %v1215_v52 = vld [vmem:[%s2236_s18 + $0x90] sm:$0xff]  ;;  %v1237_v54 = vld [vmem:[%s2236_s18 + $0x140] sm:$0xff] }
  0x38   : > { %v908_v62 = vadd.f32 %v892_v47, %v838_v60  ;;  %1730 = vmatpush1.bf16.msra.mxu0 %v1729_v23  ;;  %v1741_v59 = vpack.c.bf16 %v1198_v58, %v1197_v13  ;;  %v1229_v47 = vld [vmem:[%s2236_s18 + $0x100] sm:$0xff]  ;;  %v1216_v23 = vld [vmem:[%s2236_s18 + $0x98] sm:$0xff]  ;;  %v1238_v55 = vld [vmem:[%s2236_s18 + $0x148] sm:$0xff] }
  0x39   : > { %1740 = vmatprep.subr.bf16.mxu0 %v1739_v56  ;;  %v1789_v56 = vpack.c.bf16 %v1238_v55, %v1237_v54 }
  0x3a   : > { %v1737_v25 = vpack.c.bf16 %v908_v62, %v904_v61  ;;  %v1247_v61 = vld [vmem:[%s2236_s18 + $0x190] sm:$0xff]  ;;  %v1248_v62 = vld [vmem:[%s2236_s18 + $0x198] sm:$0xff] }
  0x3b   : > { %1634 = vmatmul.mubr.msk.f32.vlgmr.msra.gmra.mrb[0].mxu0 %vm954_vm0, %v910_v53 }
  0x3c   : > { %1738 = vmatpush1.bf16.msra.mxu1 %v1737_v25  ;;  %1031 = vmatprep.mubr.f32.mxu0 %v1843_v1  ;;  %v1775_v25 = vpack.c.bf16 %v1248_v62, %v1247_v61 }
  0x3d   : > { %1772 = vmatprep.subr.bf16.mxu1 %v1771_v18  ;;  %1742 = vmatpush3.bf16.msra.mxu0 %v1741_v59 }
  0x3f   : > { %1636 = vmatmul.mubr.msk.f32.vlgmr.msra.gmra.mrb[0].mxu1 %vm954_vm0, %v910_v53  ;;  %1635 = vmatmul.mubr.msk.f32.gmra.mrb[2].mxu0 %vm954_vm0, %v911_v16  ;;  %v1743_v53 = vpack.c.bf16 %v1216_v23, %v1215_v52 }
  0x40   : > { %1108 = vmatprep.mubr.f32.mxu1 %v1843_v1 }
  0x41   : > { %1744 = vmatprep.subr.bf16.mxu0 %v1743_v53 }
  0x43   : > { %1637 = vmatmul.mubr.msk.f32.gmra.mrb[2].mxu1 %vm954_vm0, %v911_v16  ;;  %v1199_v16 = vld [vmem:[%s2236_s18 + $0x10] sm:$0xff] }
  0x88   : > { %v918_v17 = vpop.permute.xlu0 %917  ;;  %v1120_v10 = vpop.permute.xlu1 %1119 }
  0x89   : > { %v946_v2 = vmul.f32 %v929_v29, %v918_v17  ;;  %v947_v5 = vmul.f32 %v933_v63, %v918_v17  ;;  %v948_v7 = vmul.f32 %v937_v26, %v918_v17  ;;  %v949_v33 = vmul.f32 %v941_v3, %v918_v17  ;;  %v1200_v17 = vld [vmem:[%s2236_s18 + $0x18] sm:$0xff] }
  0x8c   : > { %v923_v6 = vpop.permute.xlu0 %922  ;;  %v1125_v39 = vpop.permute.xlu1 %1124 }
  0x8d   : > { %v950_v19 = vmul.f32 %v929_v29, %v923_v6  ;;  %v951_v20 = vmul.f32 %v933_v63, %v923_v6  ;;  %v952_v37 = vmul.f32 %v937_v26, %v923_v6  ;;  %v953_v41 = vmul.f32 %v941_v3, %v923_v6  ;;  %v1230_v29 = vld [vmem:[%s2236_s18 + $0x108] sm:$0xff]  ;;  %v1231_v63 = vld [vmem:[%s2236_s18 + $0x110] sm:$0xff]  ;;  %v1217_v3 = vld [vmem:[%s2236_s18 + $0xa0] sm:$0xff] }
  0x8e   : > { %v1773_v60 = vpack.c.bf16 %v1230_v29, %v1229_v47  ;;  %v1745_v26 = vpack.c.bf16 %v1200_v17, %v1199_v16 }
  0x90   : > { %1774 = vmatpush3.bf16.msra.mxu1 %v1773_v60  ;;  %1746 = vmatpush3.bf16.msra.mxu0 %v1745_v26 }
  0x91   : > { %1776 = vmatprep.subr.bf16.mxu1 %v1775_v25 }
 0x10e   : > { %v1027_v27 = vpop.f32.mrb[0].mxu0 }
 0x10f   : > { %v1028_v12 = vadd.f32 %v1027_v27, %v946_v2  ;;  %v1029_v14 = vpop.f32.mrb[1].mxu0  ;;  %v1232_v2 = vld [vmem:[%s2236_s18 + $0x118] sm:$0xff] }
 0x110   : > { %v1030_v15 = vadd.f32 %v1029_v14, %v947_v5  ;;  %v1218_v5 = vld [vmem:[%s2236_s18 + $0xa8] sm:$0xff]  ;;  %v1777_v6 = vpack.c.bf16 %v1232_v2, %v1231_v63 }
 0x111   : > { %v2208_v24 = vadd.f32 %v1120_v10, %v1028_v12  ;;  %v1747_v27 = vpack.c.bf16 %v1218_v5, %v1217_v3  ;;  %v1201_v12 = vld [vmem:[%s2236_s18 + $0x20] sm:$0xff] }
 0x112   : > { %v1104_v1 = vpop.f32.mrb[0].mxu1  ;;  %v1033_v31 = vpop.f32.mrb[2].mxu0  ;;  %v2210_v32 = vadd.f32 %v1120_v10, %v1030_v15  ;;  %v1233_v15 = vld [vmem:[%s2236_s18 + $0x120] sm:$0xff]  ;;  %1778 = vmatpush3.bf16.msra.mxu1 %v1777_v6 }
 0x113   : > { %v1105_v30 = vadd.f32 %v1104_v1, %v948_v7  ;;  %v1106_v8 = vpop.f32.mrb[1].mxu1  ;;  %v1034_v34 = vadd.f32 %v1033_v31, %v950_v19  ;;  %v1035_v35 = vpop.f32.mrb[3].mxu0  ;;  %v1249_v7 = vld [vmem:[%s2236_s18 + $0x1a0] sm:$0xff]  ;;  %v1234_v1 = vld [vmem:[%s2236_s18 + $0x128] sm:$0xff]  ;;  %v1251_v31 = vld [vmem:[%s2236_s18 + $0x1b0] sm:$0xff]  ;;  %1748 = vmatprep.subr.bf16.mxu0 %v1747_v27 }
 0x114   : > { %v1107_v9 = vadd.f32 %v1106_v8, %v949_v33  ;;  %v1036_v38 = vadd.f32 %v1035_v35, %v951_v20  ;;  %v1202_v33 = vld [vmem:[%s2236_s18 + $0x28] sm:$0xff]  ;;  %v1220_v8 = vld [vmem:[%s2236_s18 + $0xb8] sm:$0xff]  ;;  %v1781_v20 = vpack.c.bf16 %v1234_v1, %v1233_v15  ;;  %v1203_v35 = vld [vmem:[%s2236_s18 + $0x30] sm:$0xff] }
 0x115   : > { %v2212_v36 = vadd.f32 %v1120_v10, %v1105_v30  ;;  %v2216_v42 = vadd.f32 %v1125_v39, %v1034_v34  ;;  %v1749_v19 = vpack.c.bf16 %v1202_v33, %v1201_v12  ;;  %v1219_v30 = vld [vmem:[%s2236_s18 + $0xb0] sm:$0xff]  ;;  %v1252_v34 = vld [vmem:[%s2236_s18 + $0x1b8] sm:$0xff] }
 0x116   : > { %v2214_v0 = vadd.f32 %v1120_v10, %v1107_v9  ;;  %v1110_v40 = vpop.f32.mrb[2].mxu1  ;;  %v2220_v44 = vadd.f32 %v1125_v39, %v1036_v38  ;;  %v1250_v10 = vld [vmem:[%s2236_s18 + $0x1a8] sm:$0xff]  ;;  %v1751_v9 = vpack.c.bf16 %v1220_v8, %v1219_v30  ;;  %v1783_v38 = vpack.c.bf16 %v1252_v34, %v1251_v31  ;;  %v1224_v12 = vld [vmem:[%s2236_s18 + $0xd8] sm:$0xff]  ;;  %v1207_v1 = vld [vmem:[%s2236_s18 + $0x50] sm:$0xff] }
 0x117   : > { %v1111_v43 = vadd.f32 %v1110_v40, %v952_v37  ;;  %v1112_v4 = vpop.f32.mrb[3].mxu1  ;;  %v1135_v21 = vmax.f32 %v2208_v24, %v2212_v36  ;;  %v1779_v14 = vpack.c.bf16 %v1250_v10, %v1249_v7  ;;  %v1204_v37 = vld [vmem:[%s2236_s18 + $0x38] sm:$0xff]  ;;  %1750 = vmatpush3.bf16.msra.mxu0 %v1749_v19  ;;  %v1223_v10 = vld [vmem:[%s2236_s18 + $0xd0] sm:$0xff]  ;;  %v1225_v34 = vld [vmem:[%s2236_s18 + $0xe0] sm:$0xff] }
 0x118   : > { %v1113_v45 = vadd.f32 %v1112_v4, %v953_v41  ;;  %v1136_v46 = vmax.f32 %v2210_v32, %v2214_v0  ;;  %v1236_v40 = vld [vmem:[%s2236_s18 + $0x138] sm:$0xff]  ;;  %v1221_v41 = vld [vmem:[%s2236_s18 + $0xc0] sm:$0xff]  ;;  %1752 = vmatprep.subr.bf16.mxu0 %v1751_v9  ;;  %v1759_v33 = vpack.c.bf16 %v1224_v12, %v1223_v10  ;;  %v1239_v31 = vld [vmem:[%s2236_s18 + $0x150] sm:$0xff] }
 0x119   : > { %v2224_v48 = vadd.f32 %v1125_v39, %v1111_v43  ;;  %1780 = vmatprep.subr.bf16.mxu1 %v1779_v14  ;;  %v1222_v43 = vld [vmem:[%s2236_s18 + $0xc8] sm:$0xff]  ;;  %v1253_v4 = vld [vmem:[%s2236_s18 + $0x1c0] sm:$0xff]  ;;  %v1255_v14 = vld [vmem:[%s2236_s18 + $0x1d0] sm:$0xff] }
 0x11a   : > { %v2226_v22 = vadd.f32 %v1125_v39, %v1113_v45  ;;  %v1137_v49 = vmax.f32 %v1135_v21, %v1136_v46  ;;  %v1235_v39 = vld [vmem:[%s2236_s18 + $0x130] sm:$0xff]  ;;  %v1254_v21 = vld [vmem:[%s2236_s18 + $0x1c8] sm:$0xff]  ;;  %v1753_v45 = vpack.c.bf16 %v1204_v37, %v1203_v35  ;;  %1782 = vmatpush3.bf16.msra.mxu1 %v1781_v20  ;;  %v1256_v15 = vld [vmem:[%s2236_s18 + $0x1d8] sm:$0xff] }
 0x11b   : > { %v1140_v50 = vmax.f32 %v2216_v42, %v2224_v48  ;;  %v1785_v46 = vpack.c.bf16 %v1236_v40, %v1235_v39  ;;  %1784 = vmatprep.subr.bf16.mxu1 %v1783_v38  ;;  %v1208_v19 = vld [vmem:[%s2236_s18 + $0x58] sm:$0xff]  ;;  %v1791_v30 = vpack.c.bf16 %v1256_v15, %v1255_v14  ;;  %v1226_v35 = vld [vmem:[%s2236_s18 + $0xe8] sm:$0xff]  ;;  %v1257_v37 = vld [vmem:[%s2236_s18 + $0x1e0] sm:$0xff] }
 0x11c   : > { %1138 = vmax.xlane.f32.xlu0 %v1137_v49  ;;  %v1141_v11 = vmax.f32 %v2220_v44, %v2226_v22  ;;  %v1755_v49 = vpack.c.bf16 %v1222_v43, %v1221_v41  ;;  %1754 = vmatpush3.bf16.msra.mxu0 %v1753_v45  ;;  %v1761_v8 = vpack.c.bf16 %v1208_v19, %v1207_v1  ;;  %v1240_v20 = vld [vmem:[%s2236_s18 + $0x158] sm:$0xff]  ;;  %v1258_v39 = vld [vmem:[%s2236_s18 + $0x1e8] sm:$0xff]  ;;  %v1209_v40 = vld [vmem:[%s2236_s18 + $0x60] sm:$0xff] }
 0x11d   : > { %v1793_v9 = vpack.c.bf16 %v1240_v20, %v1239_v31  ;;  %v1763_v38 = vpack.c.bf16 %v1226_v35, %v1225_v34  ;;  %v1210_v41 = vld [vmem:[%s2236_s18 + $0x68] sm:$0xff]  ;;  %v1795_v43 = vpack.c.bf16 %v1258_v39, %v1257_v37 }
 0x11e   : > { %v1142_v51 = vmax.f32 %v1140_v50, %v1141_v11  ;;  %v1205_v50 = vld [vmem:[%s2236_s18 + $0x40] sm:$0xff]  ;;  %v1206_v11 = vld [vmem:[%s2236_s18 + $0x48] sm:$0xff]  ;;  %1786 = vmatpush3.bf16.msra.mxu1 %v1785_v46  ;;  %1756 = vmatprep.subr.bf16.mxu0 %v1755_v49  ;;  %v1227_v46 = vld [vmem:[%s2236_s18 + $0xf0] sm:$0xff] }
 0x11f   : > { %v1757_v28 = vpack.c.bf16 %v1206_v11, %v1205_v50  ;;  %v1242_v45 = vld [vmem:[%s2236_s18 + $0x168] sm:$0xff]  ;;  %v1228_v50 = vld [vmem:[%s2236_s18 + $0xf8] sm:$0xff]  ;;  %v1259_v11 = vld [vmem:[%s2236_s18 + $0x1f0] sm:$0xff] }
 0x120   : > { %1143 = vmax.xlane.f32.xlu1 %v1142_v51  ;;  %v1787_v51 = vpack.c.bf16 %v1254_v21, %v1253_v4  ;;  %v1765_v4 = vpack.c.bf16 %v1210_v41, %v1209_v40  ;;  %v1241_v21 = vld [vmem:[%s2236_s18 + $0x160] sm:$0xff]  ;;  %v1767_v54 = vpack.c.bf16 %v1228_v50, %v1227_v46 }
 0x121   : > { %1758 = vmatpush3.bf16.msra.mxu0 %v1757_v28  ;;  %v1797_v49 = vpack.c.bf16 %v1242_v45, %v1241_v21  ;;  %v1211_v28 = vld [vmem:[%s2236_s18 + $0x70] sm:$0xff] }
 0x122   : > { %1788 = vmatprep.subr.bf16.mxu1 %v1787_v51  ;;  %1760 = vmatprep.subr.bf16.mxu0 %v1759_v33  ;;  %v1260_v51 = vld [vmem:[%s2236_s18 + $0x1f8] sm:$0xff] }
 0x123   : > { %1790 = vmatpush3.bf16.msra.mxu1 %v1789_v56  ;;  %v1799_v55 = vpack.c.bf16 %v1260_v51, %v1259_v11  ;;  %v1212_v56 = vld [vmem:[%s2236_s18 + $0x78] sm:$0xff] }
 0x124   : > { %1792 = vmatprep.subr.bf16.mxu1 %v1791_v30 }
 0x125   : > { %1762 = vmatpush3.bf16.msra.mxu0 %v1761_v8 }
 0x126   : > { %1764 = vmatprep.subr.bf16.mxu0 %v1763_v38 }
 0x127   : > { %1794 = vmatpush3.bf16.msra.mxu1 %v1793_v9 }
 0x128   : > { %1796 = vmatprep.subr.bf16.mxu1 %v1795_v43 }
 0x129   : > { %1766 = vmatpush3.bf16.msra.mxu0 %v1765_v4 }
 0x12a   : > { %1768 = vmatprep.subr.bf16.mxu0 %v1767_v54 }
 0x12b   : > { %1798 = vmatpush3.bf16.msra.mxu1 %v1797_v49 }
 0x12c   : > { %1800 = vmatprep.subr.bf16.mxu1 %v1799_v55 }
 0x1a9   : > { %v1139_v57 = vpop.xlane.xlu0 %1138 }
 0x1aa   : > { %v1145_v13 = vsub.f32 %v2208_v24, %v1139_v57  ;;  %v1146_v58 = vsub.f32 %v2210_v32, %v1139_v57  ;;  %v1147_v18 = vsub.f32 %v2212_v36, %v1139_v57  ;;  %v1148_v59 = vsub.f32 %v2214_v0, %v1139_v57  ;;  %v1243_v57 = vld [vmem:[%s2236_s18 + $0x170] sm:$0xff] }
 0x1ac   : > { %v1153_v47 = vmul.f32 1.442695, %v1145_v13  ;;  %v1155_v29 = vmul.f32 1.442695, %v1146_v58  ;;  %v1157_v52 = vmul.f32 1.442695, %v1147_v18  ;;  %v1769_v13 = vpack.c.bf16 %v1212_v56, %v1211_v28 }
 0x1ad   : > { %v1159_v60 = vmul.f32 1.442695, %v1148_v59  ;;  %v1144_v23 = vpop.xlane.xlu1 %1143  ;;  %v1244_v58 = vld [vmem:[%s2236_s18 + $0x178] sm:$0xff] }
 0x1ae   : > { %1815 = vpow2.f32 %v1153_v47  ;;  %v1149_v61 = vsub.f32 %v2216_v42, %v1144_v23  ;;  %v1150_v62 = vsub.f32 %v2220_v44, %v1144_v23  ;;  %v1151_v53 = vsub.f32 %v2224_v48, %v1144_v23  ;;  %1770 = vmatpush3.bf16.msra.mxu0 %v1769_v13 }
 0x1af   : > { %1817 = vpow2.f32 %v1155_v29  ;;  %v1152_v24 = vsub.f32 %v2226_v22, %v1144_v23  ;;  %v1801_v18 = vpack.c.bf16 %v1244_v58, %v1243_v57 }
 0x1b0   : > { %1819 = vpow2.f32 %v1157_v52  ;;  %v1161_v32 = vmul.f32 1.442695, %v1149_v61  ;;  %v1163_v36 = vmul.f32 1.442695, %v1150_v62  ;;  %v1165_v0 = vmul.f32 1.442695, %v1151_v53 }
 0x1b1   : > { %1821 = vpow2.f32 %v1159_v60  ;;  %v1167_v25 = vmul.f32 1.442695, %v1152_v24  ;;  %1802 = vmatpush3.bf16.msra.mxu1 %v1801_v18 }
 0x1b2   : > { %1823 = vpow2.f32 %v1161_v32 }
 0x1b3   : > { %1825 = vpow2.f32 %v1163_v36 }
 0x1b4   : > { %1827 = vpow2.f32 %v1165_v0 }
 0x1b5   : > { %1829 = vpow2.f32 %v1167_v25 }
 0x1b8   : > { %v2286_v16 = vpop.eup %1815 }
 0x1b9   : > { %v2288_v42 = vpop.eup %1817 }
 0x1ba   : > { %v2290_v44 = vpop.eup %1819  ;;  %v1169_v48 = vadd.f32 %v2288_v42, %v2286_v16 }
 0x1bb   : > { %v2294_v22 = vpop.eup %1821 }
 0x1bc   : > { %v2296_v17 = vpop.eup %1823  ;;  %v1170_v63 = vadd.f32 %v2290_v44, %v1169_v48 }
 0x1bd   : > { %v2299_v26 = vpop.eup %1825 }
 0x1be   : > { %v1171_v2 = vadd.f32 %v2294_v22, %v1170_v63  ;;  %v1174_v3 = vadd.f32 %v2299_v26, %v2296_v17  ;;  %v2304_v5 = vpop.eup %1827 }
 0x1bf   : > { %v2307_v27 = vpop.eup %1829 }
 0x1c0   : > { %1172 = vadd.xlane.f32.xlu0 %v1171_v2  ;;  %v1175_v6 = vadd.f32 %v2304_v5, %v1174_v3 }
 0x1c2   : > { %v1176_v7 = vadd.f32 %v2307_v27, %v1175_v6 }
 0x1c4   : > { %1177 = vadd.xlane.f32.xlu0 %v1176_v7 }
 0x24d   : > { %v1173_v59 = vpop.xlane.xlu0 %1172 }
 0x24e   : > { %1831 = vrcp.f32 %v1173_v59 }
 0x251   : > { %v1178_v47 = vpop.xlane.xlu0 %1177 }
 0x252   : > { %1833 = vrcp.f32 %v1178_v47 }
 0x258   : > { %v1832_v29 = vpop.eup %1831 }
 0x259   : > { %v1182_v52 = vmul.f32 %v1832_v29, %v2288_v42  ;;  %v1184_v60 = vmul.f32 %v1832_v29, %v2294_v22  ;;  %v1181_v23 = vmul.f32 %v1832_v29, %v2286_v16  ;;  %v1183_v61 = vmul.f32 %v1832_v29, %v2290_v44 }
 0x25b   : > { %1190 = vst [vmem:[%s645_s26 + $0x8] sm:$0xff] %v1182_v52  ;;  %1325 = vmatprep.mubr.f32.mxu0 %v1182_v52  ;;  %1192 = vst [vmem:[%s645_s26 + $0x18] sm:$0xff] %v1184_v60  ;;  %1400 = vmatprep.mubr.f32.mxu1 %v1184_v60 }
 0x25c   : > { %1189 = vst [vmem:[%s645_s26] sm:$0xff] %v1181_v23  ;;  %1191 = vst [vmem:[%s645_s26 + $0x10] sm:$0xff] %v1183_v61  ;;  %v1834_v62 = vpop.eup %1833  ;;  %1326 = vmatmul.mubr.f32.vlgmr.msra.gmra.mrb[4].mxu0 %v1181_v23  ;;  %1401 = vmatmul.mubr.f32.vlgmr.msra.gmra.mrb[4].mxu1 %v1183_v61 }
 0x25d   : > { %v1186_v53 = vmul.f32 %v1834_v62, %v2299_v26  ;;  %v1188_v24 = vmul.f32 %v1834_v62, %v2307_v27  ;;  %v1185_v32 = vmul.f32 %v1834_v62, %v2296_v17  ;;  %v1187_v36 = vmul.f32 %v1834_v62, %v2304_v5 }
 0x25f   : > { %1194 = vst [vmem:[%s645_s26 + $0x28] sm:$0xff] %v1186_v53  ;;  %1330 = vmatprep.mubr.f32.mxu0 %v1186_v53  ;;  %1196 = vst [vmem:[%s645_s26 + $0x38] sm:$0xff] %v1188_v24  ;;  %1405 = vmatprep.mubr.f32.mxu1 %v1188_v24 }
 0x260   : > { %1193 = vst [vmem:[%s645_s26 + $0x20] sm:$0xff] %v1185_v32  ;;  %1195 = vst [vmem:[%s645_s26 + $0x30] sm:$0xff] %v1187_v36  ;;  %1331 = vmatmul.mubr.f32.gmra.mrb[6].mxu0 %v1185_v32  ;;  %1406 = vmatmul.mubr.f32.gmra.mrb[6].mxu1 %v1187_v36 }
 0x32f   : > { %v1679_v0 = vpop.f32.mrb[4].mxu0  ;;  %v1717_v25 = vpop.f32.mrb[4].mxu1 }
 0x330   : > { %v1680_v16 = vpop.f32.mrb[5].mxu0  ;;  %v1718_v42 = vpop.f32.mrb[5].mxu1 }
 0x331   : > { %v1681_v44 = vadd.f32 %v1680_v16, %v1679_v0  ;;  %v1719_v48 = vadd.f32 %v1718_v42, %v1717_v25 }
 0x333   : > { %v1403_v22 = vadd.f32 %v1719_v48, %v1681_v44  ;;  %v1682_v17 = vpop.f32.mrb[6].mxu0  ;;  %v1720_v63 = vpop.f32.mrb[6].mxu1 }
 0x334   : > { %v1683_v26 = vpop.f32.mrb[7].mxu0  ;;  %v1721_v2 = vpop.f32.mrb[7].mxu1 }
 0x335   : > { %1412 = vst.msk [vmem:[%s640_s20] sm:$0xff] %vm1411_vm1, %v1403_v22  ;;  %v1684_v3 = vadd.f32 %v1683_v26, %v1682_v17  ;;  %v1722_v5 = vadd.f32 %v1721_v2, %v1720_v63 }
 0x337   : > { %v1408_v6 = vadd.f32 %v1722_v5, %v1684_v3 }
 0x339   : > { %1413 = vst.msk [vmem:[%s640_s20 + $0x8] sm:$0xff] %vm1411_vm1, %v1408_v6 }
 0x33a PF: > { %s25_s29 = sadd.s32 1, %s1841_s29  }
 0x33b   : > { %p22_p4 = scmp.ge.s32.totalorder %s25_s29, 4  }
 0x33d   :  { %24 = sbr.rel (!%p22_p4) target bundleno = 2 (0x2), region = 141 }

</bundles_post_ra>
